<compile_context>
chip_gen: v7x
topology: tpu7x:2x2x1
jax: 0.10.0
libtpu: 0.0.40
codegen_flags: <defaults>
</compile_context>

<pallas_src>
import functools
import math

import numpy as np
import jax
import jax.numpy as jnp
from jax.experimental import pallas as pl
from jax.experimental.pallas import tpu as pltpu

D_MODEL = 512
KERNEL_SIZE = 25  # series_decomp moving-average window


@functools.lru_cache(maxsize=None)
def _decomp_shift_operator(seq_len, label_len, token_len, kernel_size=KERNEL_SIZE):
    """Fold (replicate-padded moving-average decomposition -> seasonal tail ->
    concat zeros -> circular shifts k in {-1,0,+1}) into one linear operator.

    Returns numpy [3, L, seq_len] with val_shift_k[t] = sum_s op[k, t, s] * x_enc[s].
    Memoized: the nested Python loops run once per shape configuration.
    """
    L = label_len + token_len
    half = (kernel_size - 1) // 2
    # moving-mean operator with replicate padding (AvgPool1d over edge-padded series)
    A = np.zeros((seq_len, seq_len), np.float32)
    for t in range(seq_len):
        for j in range(-half, half + 1):
            s = min(max(t + j, 0), seq_len - 1)
            A[t, s] += 1.0 / kernel_size
    # seasonal tail (last label_len positions) followed by token_len zero rows
    V = np.zeros((L, seq_len), np.float32)
    for tau in range(label_len):
        p = seq_len - label_len + tau
        V[tau, p] += 1.0
        V[tau, :] -= A[p, :]
    # circular shifts used by the circular-padded conv1d (taps at t-1, t, t+1)
    mats = np.zeros((3, L, seq_len), np.float32)
    for k in range(3):
        for t in range(L):
            mats[k, t, :] = V[(t - 1 + k) % L, :]
    return mats


@functools.lru_cache(maxsize=None)
def _fused_constants(seq_len, label_len, token_len):
    """Constant operators consumed by the kernel (numpy, memoized).

    smA   [S, 3T] : smA[s, k*T + t]   = decomp/shift operator, tail row t, tap k
    selT  [T, 4T] : selT[t, c*T + t'] = (t == t')   (row selector)
    mmask [4T, 4] : mmask[c*T+t, c']  = (c == c')   (weight-row expander)
    """
    L = label_len + token_len
    T = token_len
    smat = _decomp_shift_operator(seq_len, label_len, token_len)      # [3, L, S]
    tail = smat[:, L - T:, :]                                          # [3, T, S]
    smA = np.ascontiguousarray(
        np.transpose(tail, (2, 0, 1)).reshape(seq_len, 3 * T))         # [S, 3T]
    selT = np.tile(np.eye(T, dtype=np.float32), (1, 4))                # [T, 4T]
    mmask = np.kron(np.eye(4, dtype=np.float32),
                    np.ones((T, 1), np.float32))                       # [4T, 4]
    return smA, selT, mmask


def _fused_embed_kernel(x_ref, mark_ref, cw_ref, tw_ref, smA_ref, selT_ref,
                        mmask_ref, out_ref):
    # x_ref     [B, S]   encoder values
    # mark_ref  [B, L]   decoder time feature (freq 'a' -> 1 feature)
    # cw_ref    [D, 3]   TokenEmbedding circular-conv taps (c_in = 1)
    # tw_ref    [D, 1]   TimeFeatureEmbedding Linear weight
    # smA_ref   [S, 3T]  decomposition + circular-shift operator (constant)
    # selT_ref  [T, 4T]  row selector (constant)
    # mmask_ref [4T, 4]  weight-row expander (constant)
    # out_ref   [B, T, D]
    B = x_ref.shape[0]
    T = selT_ref.shape[0]
    L = mark_ref.shape[1]

    # Fused embedding weight rows = (tap@t-1, tap@t, tap@t+1, time feature): [4, D].
    w4 = jnp.transpose(jnp.concatenate([cw_ref[...], tw_ref[...]], axis=1))
    # Row-expanded weight: w_exp[c*T + t, :] = w4[c, :]  (MXU performs the repeat).
    w_exp = jnp.dot(mmask_ref[...], w4, preferred_element_type=jnp.float32)   # [4T, D]

    # Shifted seasonal values for the last T rows, all batches at once: [B, 3T].
    vals = jnp.dot(x_ref[...], smA_ref[...], preferred_element_type=jnp.float32)
    feat = jnp.concatenate([vals, mark_ref[...][:, L - T:]], axis=1)          # [B, 4T]
    ft = jnp.transpose(feat)                                                  # [4T, B]

    for b in range(B):  # B is static at trace time (tiny); unrolled
        g = ft[:, b:b + 1] * w_exp                                            # [4T, D]
        out_ref[b] = jnp.dot(selT_ref[...], g,
                             preferred_element_type=jnp.float32)              # [T, D]


def autoformer_forward(x_enc, x_mark_enc, x_dec, x_mark_dec, conv_w, time_w,
                       *, seq_len, label_len, token_len):
    """Pallas equivalent of Model.forward (x_mark_enc / x_dec are unused, as in torch)."""
    del x_mark_enc, x_dec
    B = x_enc.shape[0]
    T = token_len
    L = label_len + token_len

    smA_np, selT_np, mmask_np = _fused_constants(seq_len, label_len, token_len)
    smA = jnp.asarray(smA_np)       # constants -> custom-call operands, no extra fusions
    selT = jnp.asarray(selT_np)
    mmask = jnp.asarray(mmask_np)

    # Only free, layout-preserving bitcast reshapes outside the kernel.
    x2d = x_enc.reshape(B, seq_len).astype(jnp.float32)       # [B, S]
    mark2d = x_mark_dec.reshape(B, L).astype(jnp.float32)     # [B, L]
    cw = conv_w.reshape(D_MODEL, 3).astype(jnp.float32)       # [D, 3]
    tw = time_w.astype(jnp.float32)                           # [D, 1]

    flops = 2 * (B * seq_len * 3 * T           # value-operator matmul
                 + 4 * T * 4 * D_MODEL         # weight-row expansion
                 + B * T * 4 * T * D_MODEL)    # per-batch selection matmuls
    bytes_accessed = 4 * (int(x2d.size) + int(mark2d.size) + int(cw.size)
                          + int(tw.size) + int(smA.size) + int(selT.size)
                          + int(mmask.size) + B * T * D_MODEL)

    # Single invocation, no grid, whole arrays resident in VMEM (~0.6 MiB).
    out = pl.pallas_call(
        _fused_embed_kernel,
        out_shape=jax.ShapeDtypeStruct((B, T, D_MODEL), jnp.float32),
        in_specs=[pl.BlockSpec(memory_space=pltpu.MemorySpace.VMEM)] * 7,
        out_specs=pl.BlockSpec(memory_space=pltpu.MemorySpace.VMEM),
        cost_estimate=pl.CostEstimate(flops=flops, transcendentals=0,
                                      bytes_accessed=bytes_accessed),
    )(x2d, mark2d, cw, tw, smA, selT, mmask)
    return out


def reference_forward(x_enc, x_mark_dec, conv_w, time_w, *, label_len, token_len):
    """Pure-JAX replica of the torch forward pass (eval mode) for verification."""
    B, S, C = x_enc.shape
    half = (KERNEL_SIZE - 1) // 2
    front = jnp.repeat(x_enc[:, :1, :], half, axis=1)
    end = jnp.repeat(x_enc[:, -1:, :], half, axis=1)
    xp = jnp.concatenate([front, x_enc, end], axis=1)
    mm = jnp.stack([jnp.mean(xp[:, t:t + KERNEL_SIZE, :], axis=1) for t in range(S)], axis=1)
    seasonal = x_enc - mm
    zeros = jnp.zeros((B, token_len, C), x_enc.dtype)
    val = jnp.concatenate([seasonal[:, -label_len:, :], zeros], axis=1)[:, :, 0]   # [B, L]
    prev = jnp.roll(val, 1, axis=1)    # x[(t-1) % L]
    nxt = jnp.roll(val, -1, axis=1)    # x[(t+1) % L]
    w0, w1, w2 = conv_w[:, 0, 0], conv_w[:, 0, 1], conv_w[:, 0, 2]
    value_emb = prev[:, :, None] * w0 + val[:, :, None] * w1 + nxt[:, :, None] * w2
    temporal_emb = x_mark_dec * time_w[:, 0]       # [B,L,1] * [512] -> [B,L,512]
    dec_out = value_emb + temporal_emb
    return dec_out[:, -token_len:, :]


if __name__ == "__main__":
    B, seq_len, label_len, token_len = 2, 32, 16, 16
    L = label_len + token_len
    key = jax.random.PRNGKey(0)
    k1, k2, k3, k4, k5 = jax.random.split(key, 5)

    x_enc = jax.random.normal(k1, (B, seq_len, 1), jnp.float32)
    x_mark_enc = jax.random.normal(k2, (B, seq_len, 1), jnp.float32)   # unused by forward
    x_mark_dec = jax.random.normal(k3, (B, L, 1), jnp.float32)

    # Deterministic synthetic parameters matching the module shapes:
    #  TokenEmbedding conv1d weight [d_model, c_in=1, k=3] (kaiming-style scale),
    #  TimeFeatureEmbedding Linear(1, d_model, bias=False) weight [d_model, 1].
    conv_w = jax.random.normal(k4, (D_MODEL, 1, 3), jnp.float32) * math.sqrt(2.0 / 3.0)
    time_w = jax.random.normal(k5, (D_MODEL, 1), jnp.float32)

    fwd = jax.jit(functools.partial(autoformer_forward, seq_len=seq_len,
                                    label_len=label_len, token_len=token_len))
    out = fwd(x_enc, x_mark_enc, x_enc, x_mark_dec, conv_w, time_w)
    out = jax.block_until_ready(out)

    ref = reference_forward(x_enc, x_mark_dec, conv_w, time_w,
                            label_len=label_len, token_len=token_len)
    np.testing.assert_allclose(np.asarray(out), np.asarray(ref), rtol=1e-5, atol=1e-5)
    assert out.shape == (B, token_len, D_MODEL)
    print("KERNEL_OK")
</pallas_src>

<mosaic_0001>
module attributes {stable_mosaic.version = 11 : i64} {
  func.func @_fused_embed_kernel(%arg0: memref<2x32xf32, #tpu.memory_space<vmem>>, %arg1: memref<2x32xf32, #tpu.memory_space<vmem>>, %arg2: memref<512x3xf32, #tpu.memory_space<vmem>>, %arg3: memref<512x1xf32, #tpu.memory_space<vmem>>, %arg4: memref<32x48xf32, #tpu.memory_space<vmem>>, %arg5: memref<16x64xf32, #tpu.memory_space<vmem>>, %arg6: memref<64x4xf32, #tpu.memory_space<vmem>>, %arg7: memref<2x16x512xf32, #tpu.memory_space<vmem>>) attributes {dimension_semantics = [], scalar_prefetch = 0 : i64, scratch_operands = 0 : i64, tpu.core_type = #tpu.core_type<tc>} {
    %c0 = arith.constant 0 : index
    %c0_0 = arith.constant 0 : index
    %0 = vector.load %arg2[%c0, %c0_0] : memref<512x3xf32, #tpu.memory_space<vmem>>, vector<512x3xf32>
    %c0_1 = arith.constant 0 : index
    %c0_2 = arith.constant 0 : index
    %1 = vector.load %arg3[%c0_1, %c0_2] : memref<512x1xf32, #tpu.memory_space<vmem>>, vector<512x1xf32>
    %2 = tpu.concatenate %0, %1 in 1 : vector<512x3xf32>, vector<512x1xf32> -> vector<512x4xf32>
    %3 = tpu.transpose %2, [1, 0] : vector<512x4xf32> -> vector<4x512xf32>
    %c0_3 = arith.constant 0 : index
    %c0_4 = arith.constant 0 : index
    %4 = vector.load %arg6[%c0_3, %c0_4] : memref<64x4xf32, #tpu.memory_space<vmem>>, vector<64x4xf32>
    %cst = arith.constant dense<0.000000e+00> : vector<64x512xf32>
    %5 = tpu.matmul %4, %3, %cst {dimension_numbers = #tpu.dot_dimension_numbers<[1], [0], [0], [1], [0, 0, 1, 1], [], []>} : vector<64x4xf32>, vector<4x512xf32>, vector<64x512xf32> -> vector<64x512xf32>
    %c0_5 = arith.constant 0 : index
    %c0_6 = arith.constant 0 : index
    %6 = vector.load %arg0[%c0_5, %c0_6] : memref<2x32xf32, #tpu.memory_space<vmem>>, vector<2x32xf32>
    %c0_7 = arith.constant 0 : index
    %c0_8 = arith.constant 0 : index
    %7 = vector.load %arg4[%c0_7, %c0_8] : memref<32x48xf32, #tpu.memory_space<vmem>>, vector<32x48xf32>
    %cst_9 = arith.constant dense<0.000000e+00> : vector<2x48xf32>
    %8 = tpu.matmul %6, %7, %cst_9 {dimension_numbers = #tpu.dot_dimension_numbers<[1], [0], [0], [1], [0, 0, 1, 1], [], []>} : vector<2x32xf32>, vector<32x48xf32>, vector<2x48xf32> -> vector<2x48xf32>
    %c0_10 = arith.constant 0 : index
    %c0_11 = arith.constant 0 : index
    %9 = vector.load %arg1[%c0_10, %c0_11] : memref<2x32xf32, #tpu.memory_space<vmem>>, vector<2x32xf32>
    %10 = vector.extract_strided_slice %9 {offsets = [0, 16], sizes = [2, 16], strides = [1, 1]} : vector<2x32xf32> to vector<2x16xf32>
    %11 = tpu.concatenate %8, %10 in 1 : vector<2x48xf32>, vector<2x16xf32> -> vector<2x64xf32>
    %12 = tpu.transpose %11, [1, 0] : vector<2x64xf32> -> vector<64x2xf32>
    %13 = vector.extract_strided_slice %12 {offsets = [0, 0], sizes = [64, 1], strides = [1, 1]} : vector<64x2xf32> to vector<64x1xf32>
    %14 = vector.broadcast %13 : vector<64x1xf32> to vector<64x512xf32>
    %15 = arith.mulf %14, %5 : vector<64x512xf32>
    %c0_12 = arith.constant 0 : index
    %c0_13 = arith.constant 0 : index
    %16 = vector.load %arg5[%c0_12, %c0_13] : memref<16x64xf32, #tpu.memory_space<vmem>>, vector<16x64xf32>
    %cst_14 = arith.constant dense<0.000000e+00> : vector<16x512xf32>
    %17 = tpu.matmul %16, %15, %cst_14 {dimension_numbers = #tpu.dot_dimension_numbers<[1], [0], [0], [1], [0, 0, 1, 1], [], []>} : vector<16x64xf32>, vector<64x512xf32>, vector<16x512xf32> -> vector<16x512xf32>
    %c0_15 = arith.constant 0 : index
    %c0_16 = arith.constant 0 : index
    %c0_17 = arith.constant 0 : index
    %18 = vector.load %arg7[%c0_15, %c0_16, %c0_17] : memref<2x16x512xf32, #tpu.memory_space<vmem>>, vector<1x16x512xf32>
    %19 = vector.shape_cast %18 : vector<1x16x512xf32> to vector<16x512xf32>
    %20 = vector.shape_cast %17 : vector<16x512xf32> to vector<1x16x512xf32>
    tpu.vector_store %arg7[%c0_15, %c0_16, %c0_17], %20 {strides = array<i32>} : memref<2x16x512xf32, #tpu.memory_space<vmem>>, vector<1x16x512xf32>,
    %21 = vector.extract_strided_slice %12 {offsets = [0, 1], sizes = [64, 1], strides = [1, 1]} : vector<64x2xf32> to vector<64x1xf32>
    %22 = vector.broadcast %21 : vector<64x1xf32> to vector<64x512xf32>
    %23 = arith.mulf %22, %5 : vector<64x512xf32>
    %c0_18 = arith.constant 0 : index
    %c0_19 = arith.constant 0 : index
    %24 = vector.load %arg5[%c0_18, %c0_19] : memref<16x64xf32, #tpu.memory_space<vmem>>, vector<16x64xf32>
    %cst_20 = arith.constant dense<0.000000e+00> : vector<16x512xf32>
    %25 = tpu.matmul %24, %23, %cst_20 {dimension_numbers = #tpu.dot_dimension_numbers<[1], [0], [0], [1], [0, 0, 1, 1], [], []>} : vector<16x64xf32>, vector<64x512xf32>, vector<16x512xf32> -> vector<16x512xf32>
    %c1 = arith.constant 1 : index
    %c0_21 = arith.constant 0 : index
    %c0_22 = arith.constant 0 : index
    %26 = vector.load %arg7[%c1, %c0_21, %c0_22] : memref<2x16x512xf32, #tpu.memory_space<vmem>>, vector<1x16x512xf32>
    %27 = vector.shape_cast %26 : vector<1x16x512xf32> to vector<16x512xf32>
    %28 = vector.shape_cast %25 : vector<16x512xf32> to vector<1x16x512xf32>
    tpu.vector_store %arg7[%c1, %c0_21, %c0_22], %28 {strides = array<i32>} : memref<2x16x512xf32, #tpu.memory_space<vmem>>, vector<1x16x512xf32>,
    return
  }
}

</mosaic_0001>

<bundles_post_ra>
// kernel: autoformer_forward.1
= control target key start
LH: loop header
LB: loop body
LE: loop exit
PB: predicated region body
PF: predicated region fallthrough
CT: control target
= control target key end

     0   :  { %s2118_s17 = smov 3   ;;  %s3061_s0 = inlined_call_operand.vmem [shape: f32[2,32], index: 0, kind: input, shape index: {}]   ;;  %s3062_s1 = inlined_call_operand.vmem [shape: f32[2,32], index: 1, kind: input, shape index: {}]   ;;  %s3063_s2 = inlined_call_operand.vmem [shape: f32[512,3], index: 2, kind: input, shape index: {}]   ;;  %s3064_s3 = inlined_call_operand.vmem [shape: f32[512,1], index: 3, kind: input, shape index: {}]   ;;  %s3065_s4 = inlined_call_operand.vmem [shape: f32[32,48], index: 4, kind: input, shape index: {}]   ;;  %s3066_s5 = inlined_call_operand.vmem [shape: f32[16,64], index: 5, kind: input, shape index: {}]   ;;  %s3067_s6 = inlined_call_operand.vmem [shape: f32[64,4], index: 6, kind: input, shape index: {}]   ;;  %s3068_s7 = inlined_call_operand.hbm [shape: f32[2,16,512], index: 7, kind: output, shape index: {}]  }
   0x1   :  { %v107_v0 = vld [vmem:[%s3064_s3 + $0x80] sm:$0xff]  ;;  %v108_v1 = vld [vmem:[%s3064_s3 + $0x88] sm:$0xff]  ;;  %v109_v5 = vld [vmem:[%s3064_s3 + $0x90] sm:$0xff] }
   0x2   :  { %v91_v2 = vld [vmem:[%s3064_s3] sm:$0xff]  ;;  %v1923_v3 = vpack.i.bf16 %v108_v1, %v107_v0  ;;  %v92_v4 = vld [vmem:[%s3064_s3 + $0x8] sm:$0xff]  ;;  %v110_v6 = vld [vmem:[%s3064_s3 + $0x98] sm:$0xff] }
   0x3   :  { %v1933_v7 = vpack.i.bf16 %v110_v6, %v109_v5  ;;  %v93_v8 = vld [vmem:[%s3064_s3 + $0x10] sm:$0xff]  ;;  %v94_v9 = vld [vmem:[%s3064_s3 + $0x18] sm:$0xff]  ;;  %v1928_v10 = vpack.i.bf16 %v92_v4, %v91_v2  ;;  %v111_v12 = vld [vmem:[%s3064_s3 + $0xa0] sm:$0xff] }
   0x4   :  { %1924 = vrot.lane.b32.xlu0 %v1923_v3, %s2118_s17  ;;  %v1938_v11 = vpack.i.bf16 %v94_v9, %v93_v8  ;;  %v112_v13 = vld [vmem:[%s3064_s3 + $0xa8] sm:$0xff]  ;;  %v95_v14 = vld [vmem:[%s3064_s3 + $0x20] sm:$0xff]  ;;  %v113_v18 = vld [vmem:[%s3064_s3 + $0xb0] sm:$0xff] }
   0x5   :  { %1934 = vrot.lane.b32.xlu1 %v1933_v7, %s2118_s17  ;;  %v96_v15 = vld [vmem:[%s3064_s3 + $0x28] sm:$0xff]  ;;  %v1943_v16 = vpack.i.bf16 %v112_v13, %v111_v12  ;;  %v114_v19 = vld [vmem:[%s3064_s3 + $0xb8] sm:$0xff]  ;;  %v97_v20 = vld [vmem:[%s3064_s3 + $0x30] sm:$0xff] }
   0x6   :  { %v1948_v17 = vpack.i.bf16 %v96_v15, %v95_v14  ;;  %v98_v21 = vld [vmem:[%s3064_s3 + $0x38] sm:$0xff]  ;;  %v1953_v22 = vpack.i.bf16 %v114_v19, %v113_v18  ;;  %v115_v24 = vld [vmem:[%s3064_s3 + $0xc0] sm:$0xff]  ;;  %v116_v25 = vld [vmem:[%s3064_s3 + $0xc8] sm:$0xff] }
   0x7   :  { %v1958_v23 = vpack.i.bf16 %v98_v21, %v97_v20  ;;  %v99_v26 = vld [vmem:[%s3064_s3 + $0x40] sm:$0xff]  ;;  %v100_v27 = vld [vmem:[%s3064_s3 + $0x48] sm:$0xff]  ;;  %v1963_v28 = vpack.i.bf16 %v116_v25, %v115_v24  ;;  %v117_v30 = vld [vmem:[%s3064_s3 + $0xd0] sm:$0xff] }
   0x8   :  { %1929 = vrot.lane.b32.xlu0 %v1928_v10, %s2118_s17  ;;  %v1968_v29 = vpack.i.bf16 %v100_v27, %v99_v26  ;;  %v118_v31 = vld [vmem:[%s3064_s3 + $0xd8] sm:$0xff] }
   0x9   :  { %1939 = vrot.lane.b32.xlu1 %v1938_v11, %s2118_s17 }
   0xc   :  { %1944 = vrot.lane.b32.xlu0 %v1943_v16, %s2118_s17 }
   0xd   :  { %1949 = vrot.lane.b32.xlu1 %v1948_v17, %s2118_s17 }
  0x10   :  { %1954 = vrot.lane.b32.xlu0 %v1953_v22, %s2118_s17 }
  0x11   :  { %1959 = vrot.lane.b32.xlu1 %v1958_v23, %s2118_s17 }
  0x12   :  { %12 = vsyncpa [#allocation3], 0  ;;  %v101_v32 = vld [vmem:[%s3064_s3 + $0x50] sm:$0xff]  ;;  %v102_v33 = vld [vmem:[%s3064_s3 + $0x58] sm:$0xff]  ;;  %v1973_v34 = vpack.i.bf16 %v118_v31, %v117_v30  ;;  %vm484_vm0 = vcmask 31744   ;;  %vm411_vm1 = vcmask 23552  }
  0x13   :  { %v1978_v35 = vpack.i.bf16 %v102_v33, %v101_v32  ;;  %v119_v36 = vld [vmem:[%s3064_s3 + $0xe0] sm:$0xff]  ;;  %v120_v37 = vld [vmem:[%s3064_s3 + $0xe8] sm:$0xff]  ;;  %v121_v42 = vld [vmem:[%s3064_s3 + $0xf0] sm:$0xff]  ;;  %s2119_s21 = smov 32   ;;  %vm2121_vm3 = vmmov 0   ;;  %vm932_vm4 = vcmask 261120  }
  0x14   :  { %1964 = vrot.lane.b32.xlu0 %v1963_v28, %s2118_s17  ;;  %v103_v38 = vld [vmem:[%s3064_s3 + $0x60] sm:$0xff]  ;;  %v104_v39 = vld [vmem:[%s3064_s3 + $0x68] sm:$0xff]  ;;  %v1983_v40 = vpack.i.bf16 %v120_v37, %v119_v36  ;;  %v122_v43 = vld [vmem:[%s3064_s3 + $0xf8] sm:$0xff]  ;;  %vm1011_vm5 = vcmask 392192   ;;  %vm1119_vm6 = vcmask 523264  }
  0x15   :  { %1969 = vrot.lane.b32.xlu1 %v1968_v29, %s2118_s17  ;;  %v1988_v41 = vpack.i.bf16 %v104_v39, %v103_v38  ;;  %v105_v44 = vld [vmem:[%s3064_s3 + $0x70] sm:$0xff]  ;;  %v106_v45 = vld [vmem:[%s3064_s3 + $0x78] sm:$0xff]  ;;  %v1993_v46 = vpack.i.bf16 %v122_v43, %v121_v42  ;;  %v2282_v48 = vld [vmem:[%s3067_s6] sm:$0xff] }
  0x16   :  { %v1998_v47 = vpack.i.bf16 %v106_v45, %v105_v44  ;;  %1660 = vmatprep.mubr.msk.f32.mxu0 %vm484_vm0, %v2282_v48  ;;  %1708 = vmatprep.mubr.msk.f32.mxu1 %vm484_vm0, %v2282_v48  ;;  %v139_v49 = vld [vmem:[%s3064_s3 + $0x180] sm:$0xff]  ;;  %v140_v50 = vld [vmem:[%s3064_s3 + $0x188] sm:$0xff]  ;;  %v141_v54 = vld [vmem:[%s3064_s3 + $0x190] sm:$0xff] }
  0x17   :  { %v123_v51 = vld [vmem:[%s3064_s3 + $0x100] sm:$0xff]  ;;  %v2003_v52 = vpack.i.bf16 %v140_v50, %v139_v49  ;;  %v124_v53 = vld [vmem:[%s3064_s3 + $0x108] sm:$0xff]  ;;  %v142_v55 = vld [vmem:[%s3064_s3 + $0x198] sm:$0xff] }
  0x18   :  { %1974 = vrot.lane.b32.xlu0 %v1973_v34, %s2118_s17  ;;  %v2008_v56 = vpack.i.bf16 %v124_v53, %v123_v51  ;;  %v125_v57 = vld [vmem:[%s3064_s3 + $0x110] sm:$0xff]  ;;  %v126_v58 = vld [vmem:[%s3064_s3 + $0x118] sm:$0xff]  ;;  %v2013_v59 = vpack.i.bf16 %v142_v55, %v141_v54  ;;  %v143_v61 = vld [vmem:[%s3064_s3 + $0x1a0] sm:$0xff] }
  0x19   :  { %1979 = vrot.lane.b32.xlu1 %v1978_v35, %s2118_s17  ;;  %v2018_v60 = vpack.i.bf16 %v126_v58, %v125_v57  ;;  %v144_v62 = vld [vmem:[%s3064_s3 + $0x1a8] sm:$0xff]  ;;  %v127_v63 = vld [vmem:[%s3064_s3 + $0x120] sm:$0xff]  ;;  %v145_v3 = vld [vmem:[%s3064_s3 + $0x1b0] sm:$0xff] }
  0x1a   :  { %v128_v0 = vld [vmem:[%s3064_s3 + $0x128] sm:$0xff]  ;;  %v2023_v1 = vpack.i.bf16 %v144_v62, %v143_v61  ;;  %v146_v4 = vld [vmem:[%s3064_s3 + $0x1b8] sm:$0xff]  ;;  %v129_v5 = vld [vmem:[%s3064_s3 + $0x130] sm:$0xff] }
  0x1b   :  { %v2028_v2 = vpack.i.bf16 %v128_v0, %v127_v63  ;;  %v130_v6 = vld [vmem:[%s3064_s3 + $0x138] sm:$0xff]  ;;  %v2033_v7 = vpack.i.bf16 %v146_v4, %v145_v3  ;;  %v147_v9 = vld [vmem:[%s3064_s3 + $0x1c0] sm:$0xff]  ;;  %v148_v10 = vld [vmem:[%s3064_s3 + $0x1c8] sm:$0xff] }
  0x1c   :  { %1984 = vrot.lane.b32.xlu0 %v1983_v40, %s2118_s17  ;;  %v2038_v8 = vpack.i.bf16 %v130_v6, %v129_v5  ;;  %v131_v11 = vld [vmem:[%s3064_s3 + $0x140] sm:$0xff]  ;;  %v132_v12 = vld [vmem:[%s3064_s3 + $0x148] sm:$0xff]  ;;  %v2043_v13 = vpack.i.bf16 %v148_v10, %v147_v9  ;;  %v149_v15 = vld [vmem:[%s3064_s3 + $0x1d0] sm:$0xff] }
  0x1d   :  { %1989 = vrot.lane.b32.xlu1 %v1988_v41, %s2118_s17  ;;  %v2048_v14 = vpack.i.bf16 %v132_v12, %v131_v11  ;;  %v150_v16 = vld [vmem:[%s3064_s3 + $0x1d8] sm:$0xff]  ;;  %v133_v17 = vld [vmem:[%s3064_s3 + $0x150] sm:$0xff]  ;;  %v151_v21 = vld [vmem:[%s3064_s3 + $0x1e0] sm:$0xff] }
  0x1e   :  { %v134_v18 = vld [vmem:[%s3064_s3 + $0x158] sm:$0xff]  ;;  %v2053_v19 = vpack.i.bf16 %v150_v16, %v149_v15  ;;  %v152_v22 = vld [vmem:[%s3064_s3 + $0x1e8] sm:$0xff]  ;;  %v135_v23 = vld [vmem:[%s3064_s3 + $0x160] sm:$0xff] }
  0x1f   :  { %v2058_v20 = vpack.i.bf16 %v134_v18, %v133_v17  ;;  %v136_v24 = vld [vmem:[%s3064_s3 + $0x168] sm:$0xff]  ;;  %v43_v26 = vld [vmem:[%s3063_s2 + $0x80] sm:$0xff]  ;;  %v45_v28 = vld [vmem:[%s3063_s2 + $0x90] sm:$0xff]  ;;  %v2063_v29 = vpack.i.bf16 %v152_v22, %v151_v21 }
  0x20   :  { %1994 = vrot.lane.b32.xlu0 %v1993_v46, %s2118_s17  ;;  %v44_v27 = vld [vmem:[%s3063_s2 + $0x88] sm:$0xff]  ;;  %v46_v33 = vld [vmem:[%s3063_s2 + $0x98] sm:$0xff]  ;;  %v2068_v34 = vpack.i.bf16 %v136_v24, %v135_v23  ;;  %v153_v35 = vld [vmem:[%s3064_s3 + $0x1f0] sm:$0xff] }
  0x21   :  { %1999 = vrot.lane.b32.xlu1 %v1998_v47, %s2118_s17  ;;  %v154_v36 = vld [vmem:[%s3064_s3 + $0x1f8] sm:$0xff]  ;;  %v137_v39 = vld [vmem:[%s3064_s3 + $0x170] sm:$0xff]  ;;  %vm2412_vm2 = vmpackc.low %vm484_vm0, %vm484_vm0 }
  0x22   :  { %v138_v40 = vld [vmem:[%s3064_s3 + $0x178] sm:$0xff]  ;;  %v27_v49 = vld [vmem:[%s3063_s2] sm:$0xff]  ;;  %v28_v50 = vld [vmem:[%s3063_s2 + $0x8] sm:$0xff]  ;;  %v2073_v51 = vpack.i.bf16 %v154_v36, %v153_v35 }
  0x23   :  { %v2078_v55 = vpack.i.bf16 %v138_v40, %v137_v39  ;;  %v29_v62 = vld [vmem:[%s3063_s2 + $0x10] sm:$0xff]  ;;  %v30_v63 = vld [vmem:[%s3063_s2 + $0x18] sm:$0xff]  ;;  %v47_v3 = vld [vmem:[%s3063_s2 + $0xa0] sm:$0xff] }
  0x24   :  { %2004 = vrot.lane.b32.xlu0 %v2003_v52, %s2118_s17  ;;  %v48_v4 = vld [vmem:[%s3063_s2 + $0xa8] sm:$0xff]  ;;  %v1006_v5 = vld [vmem:[%s3062_s1] sm:$0x3]  ;;  %v50_v21 = vld [vmem:[%s3063_s2 + $0xb8] sm:$0xff] }
  0x25   :  { %2009 = vrot.lane.b32.xlu1 %v2008_v56, %s2118_s17  ;;  %v31_v16 = vld [vmem:[%s3063_s2 + $0x20] sm:$0xff]  ;;  %v32_v17 = vld [vmem:[%s3063_s2 + $0x28] sm:$0xff] }
  0x26   :  { %v51_v36 = vld [vmem:[%s3063_s2 + $0xc0] sm:$0xff] }
  0x28   :  { %2014 = vrot.lane.b32.xlu0 %v2013_v59, %s2118_s17 }
  0x29   :  { %2019 = vrot.lane.b32.xlu1 %v2018_v60, %s2118_s17 }
  0x2c   :  { %2024 = vrot.lane.b32.xlu0 %v2023_v1, %s2118_s17 }
  0x2d   :  { %2029 = vrot.lane.b32.xlu1 %v2028_v2, %s2118_s17 }
  0x30   :  { %2034 = vrot.lane.b32.xlu0 %v2033_v7, %s2118_s17 }
  0x31   :  { %2039 = vrot.lane.b32.xlu1 %v2038_v8, %s2118_s17 }
  0x34   :  { %2044 = vrot.lane.b32.xlu0 %v2043_v13, %s2118_s17 }
  0x35   :  { %2049 = vrot.lane.b32.xlu1 %v2048_v14, %s2118_s17 }
  0x38   :  { %2054 = vrot.lane.b32.xlu0 %v2053_v19, %s2118_s17 }
  0x39   :  { %2059 = vrot.lane.b32.xlu1 %v2058_v20, %s2118_s17  ;;  %v49_v20 = vld [vmem:[%s3063_s2 + $0xb0] sm:$0xff] }
  0x3c   :  { %2064 = vrot.lane.b32.xlu0 %v2063_v29, %s2118_s17 }
  0x3d   :  { %2069 = vrot.lane.b32.xlu1 %v2068_v34, %s2118_s17 }
  0x40   :  { %2074 = vrot.lane.b32.xlu0 %v2073_v51, %s2118_s17  ;;  %v36_v51 = vld [vmem:[%s3063_s2 + $0x48] sm:$0xff] }
  0x41   :  { %2079 = vrot.lane.b32.xlu1 %v2078_v55, %s2118_s17  ;;  %v54_v55 = vld [vmem:[%s3063_s2 + $0xd8] sm:$0xff] }
  0x44   :  { %1008 = vrot.lane.b32.xlu0 %v1006_v5, %s2119_s21 }
  0x76   :  { %v1925_v25 = vpop.permute.xlu0 %1924 }
  0x77   :  { %v1927_v30 = vunpack.i.h.bf16 %v1925_v25  ;;  %v1926_v31 = vunpack.i.l.bf16 %v1925_v25  ;;  %v1935_v32 = vpop.permute.xlu1 %1934 }
  0x78   :  { %v1937_v37 = vunpack.i.h.bf16 %v1935_v32  ;;  %v1936_v38 = vunpack.i.l.bf16 %v1935_v32  ;;  %v33_v32 = vld [vmem:[%s3063_s2 + $0x30] sm:$0xff] }
  0x79   :  { %v428_v41 = vsel %vm411_vm1, %v43_v26, %v1926_v31  ;;  %v429_v42 = vsel %vm411_vm1, %v44_v27, %v1927_v30 }
  0x7a   :  { %v1930_v44 = vpop.permute.xlu0 %1929  ;;  %v1740_v45 = vpack.c.bf16 %v429_v42, %v428_v41  ;;  %v430_v46 = vsel %vm411_vm1, %v45_v28, %v1936_v38  ;;  %v431_v47 = vsel %vm411_vm1, %v46_v33, %v1937_v37  ;;  %v34_v33 = vld [vmem:[%s3063_s2 + $0x38] sm:$0xff]  ;;  %v52_v37 = vld [vmem:[%s3063_s2 + $0xc8] sm:$0xff] }
  0x7b   :  { %v1932_v52 = vunpack.i.h.bf16 %v1930_v44  ;;  %v1931_v53 = vunpack.i.l.bf16 %v1930_v44  ;;  %v1940_v54 = vpop.permute.xlu1 %1939  ;;  %v1746_v56 = vpack.c.bf16 %v431_v47, %v430_v46 }
  0x7c   :  { %1742 = vmatprep.subr.msk.bf16.mxu0 %vm2412_vm2, %v1740_v45  ;;  %v1942_v59 = vunpack.i.h.bf16 %v1940_v54  ;;  %v1941_v60 = vunpack.i.l.bf16 %v1940_v54  ;;  %v53_v54 = vld [vmem:[%s3063_s2 + $0xd0] sm:$0xff] }
  0x7d   :  { %v412_v57 = vsel %vm411_vm1, %v27_v49, %v1931_v53  ;;  %v413_v58 = vsel %vm411_vm1, %v28_v50, %v1932_v52  ;;  %v35_v50 = vld [vmem:[%s3063_s2 + $0x40] sm:$0xff] }
  0x7e   :  { %v1743_v61 = vpack.c.bf16 %v413_v58, %v412_v57  ;;  %v1945_v0 = vpop.permute.xlu0 %1944  ;;  %v414_v6 = vsel %vm411_vm1, %v29_v62, %v1941_v60  ;;  %v415_v7 = vsel %vm411_vm1, %v30_v63, %v1942_v59 }
  0x7f   :  { %v1947_v1 = vunpack.i.h.bf16 %v1945_v0  ;;  %v1946_v2 = vunpack.i.l.bf16 %v1945_v0  ;;  %v1950_v10 = vpop.permute.xlu1 %1949  ;;  %v1749_v12 = vpack.c.bf16 %v415_v7, %v414_v6  ;;  %v55_v6 = vld [vmem:[%s3063_s2 + $0xe0] sm:$0xff]  ;;  %v56_v7 = vld [vmem:[%s3063_s2 + $0xe8] sm:$0xff] }
  0x80   :  { %1745 = vmatpush3.bf16.xpose.msk.msra.mxu0 %vm2412_vm2, %v1743_v61  ;;  %v1952_v14 = vunpack.i.h.bf16 %v1950_v10  ;;  %v1951_v15 = vunpack.i.l.bf16 %v1950_v10 }
  0x81   :  { %1748 = vmatprep.subr.msk.bf16.mxu0 %vm2412_vm2, %v1746_v56  ;;  %v432_v8 = vsel %vm411_vm1, %v47_v3, %v1946_v2  ;;  %v433_v9 = vsel %vm411_vm1, %v48_v4, %v1947_v1  ;;  %v37_v2 = vld [vmem:[%s3063_s2 + $0x50] sm:$0xff]  ;;  %v38_v3 = vld [vmem:[%s3063_s2 + $0x58] sm:$0xff] }
  0x82   :  { %v1955_v11 = vpop.permute.xlu0 %1954  ;;  %v1752_v13 = vpack.c.bf16 %v433_v9, %v432_v8  ;;  %v416_v22 = vsel %vm411_vm1, %v31_v16, %v1951_v15  ;;  %v417_v23 = vsel %vm411_vm1, %v32_v17, %v1952_v14 }
  0x83   :  { %v1957_v18 = vunpack.i.h.bf16 %v1955_v11  ;;  %v1956_v19 = vunpack.i.l.bf16 %v1955_v11  ;;  %v1960_v26 = vpop.permute.xlu1 %1959  ;;  %v1755_v28 = vpack.c.bf16 %v417_v23, %v416_v22  ;;  %v57_v22 = vld [vmem:[%s3063_s2 + $0xf0] sm:$0xff]  ;;  %v58_v23 = vld [vmem:[%s3063_s2 + $0xf8] sm:$0xff] }
  0x84   :  { %v1962_v30 = vunpack.i.h.bf16 %v1960_v26  ;;  %v1961_v31 = vunpack.i.l.bf16 %v1960_v26 }
  0x85   :  { %v434_v24 = vsel %vm411_vm1, %v49_v20, %v1956_v19  ;;  %v435_v25 = vsel %vm411_vm1, %v50_v21, %v1957_v18  ;;  %v39_v18 = vld [vmem:[%s3063_s2 + $0x60] sm:$0xff]  ;;  %v40_v19 = vld [vmem:[%s3063_s2 + $0x68] sm:$0xff] }
  0x86   :  { %v1965_v27 = vpop.permute.xlu0 %1964  ;;  %v1758_v29 = vpack.c.bf16 %v435_v25, %v434_v24  ;;  %v418_v38 = vsel %vm411_vm1, %v33_v32, %v1961_v31  ;;  %v419_v39 = vsel %vm411_vm1, %v34_v33, %v1962_v30  ;;  %v41_v33 = vld [vmem:[%s3063_s2 + $0x70] sm:$0xff] }
  0x87   :  { %v1967_v34 = vunpack.i.h.bf16 %v1965_v27  ;;  %v1966_v35 = vunpack.i.l.bf16 %v1965_v27  ;;  %v1970_v42 = vpop.permute.xlu1 %1969  ;;  %v1761_v45 = vpack.c.bf16 %v419_v39, %v418_v38  ;;  %v2120_v38 = vmov 0.0|0.0   ;;  %v928_v39 = vld [vmem:[%s3065_s4] sm:$0xff] }
  0x88   :  { %1751 = vmatpush3.bf16.xpose.msk.msra.mxu0 %vm2412_vm2, %v1749_v12  ;;  %v1972_v47 = vunpack.i.h.bf16 %v1970_v42  ;;  %v1971_v49 = vunpack.i.l.bf16 %v1970_v42  ;;  %v2579_v42 = vld [vmem:[%s3067_s6 + $0x8] sm:$0xff] }
  0x89   :  { %1754 = vmatprep.subr.msk.bf16.mxu0 %vm2412_vm2, %v1752_v13  ;;  %v436_v40 = vsel %vm411_vm1, %v51_v36, %v1966_v35  ;;  %v437_v41 = vsel %vm411_vm1, %v52_v37, %v1967_v34  ;;  %v42_v34 = vld [vmem:[%s3063_s2 + $0x78] sm:$0xff] }
  0x8a   :  { %v1975_v44 = vpop.permute.xlu0 %1974  ;;  %v1764_v46 = vpack.c.bf16 %v437_v41, %v436_v40  ;;  %v420_v56 = vsel %vm411_vm1, %v35_v50, %v1971_v49  ;;  %v421_v57 = vsel %vm411_vm1, %v36_v51, %v1972_v47  ;;  %v929_v40 = vld [vmem:[%s3065_s4 + $0x8] sm:$0xff]  ;;  %v2594_v47 = vld [vmem:[%s3067_s6 + $0x10] sm:$0xff]  ;;  %v2603_v49 = vld [vmem:[%s3067_s6 + $0x18] sm:$0xff] }
  0x8b   :  { %v1977_v52 = vunpack.i.h.bf16 %v1975_v44  ;;  %v1976_v53 = vunpack.i.l.bf16 %v1975_v44  ;;  %v1980_v60 = vpop.permute.xlu1 %1979  ;;  %v1767_v62 = vpack.c.bf16 %v421_v57, %v420_v56  ;;  %v1837_v41 = vpack.c.bf16 %v929_v40, %v928_v39  ;;  %v930_v44 = vld [vmem:[%s3065_s4 + $0x10] sm:$0xff]  ;;  %v2612_v50 = vld [vmem:[%s3067_s6 + $0x20] sm:$0xff]  ;;  %v2621_v51 = vld [vmem:[%s3067_s6 + $0x28] sm:$0xff] }
  0x8c   :  { %v1982_v0 = vunpack.i.h.bf16 %v1980_v60  ;;  %v1981_v1 = vunpack.i.l.bf16 %v1980_v60  ;;  %v2645_v56 = vld [vmem:[%s3067_s6 + $0x38] sm:$0xff]  ;;  %v59_v60 = vld [vmem:[%s3063_s2 + $0x100] sm:$0xff] }
  0x8d   :  { %v438_v58 = vsel %vm411_vm1, %v53_v54, %v1976_v53  ;;  %v439_v59 = vsel %vm411_vm1, %v54_v55, %v1977_v52  ;;  %v2630_v52 = vld [vmem:[%s3067_s6 + $0x30] sm:$0xff]  ;;  %v75_v54 = vld [vmem:[%s3063_s2 + $0x180] sm:$0xff]  ;;  %v76_v55 = vld [vmem:[%s3063_s2 + $0x188] sm:$0xff] }
  0x8e   :  { %v1985_v61 = vpop.permute.xlu0 %1984  ;;  %v1770_v63 = vpack.c.bf16 %v439_v59, %v438_v58  ;;  %v422_v8 = vsel %vm411_vm1, %v37_v2, %v1981_v1  ;;  %v423_v9 = vsel %vm411_vm1, %v38_v3, %v1982_v0 }
  0x8f   :  { %v1987_v4 = vunpack.i.h.bf16 %v1985_v61  ;;  %v1986_v5 = vunpack.i.l.bf16 %v1985_v61  ;;  %v1990_v12 = vpop.permute.xlu1 %1989  ;;  %v1773_v14 = vpack.c.bf16 %v423_v9, %v422_v8  ;;  %v60_v61 = vld [vmem:[%s3063_s2 + $0x108] sm:$0xff] }
  0x90   :  { %1757 = vmatpush3.bf16.xpose.msk.msra.mxu0 %vm2412_vm2, %v1755_v28  ;;  %v1992_v16 = vunpack.i.h.bf16 %v1990_v12  ;;  %v1991_v17 = vunpack.i.l.bf16 %v1990_v12  ;;  %v61_v12 = vld [vmem:[%s3063_s2 + $0x110] sm:$0xff] }
  0x91   :  { %1760 = vmatprep.subr.msk.bf16.mxu0 %vm2412_vm2, %v1758_v29  ;;  %v440_v10 = vsel %vm411_vm1, %v55_v6, %v1986_v5  ;;  %v441_v11 = vsel %vm411_vm1, %v56_v7, %v1987_v4  ;;  %v77_v6 = vld [vmem:[%s3063_s2 + $0x190] sm:$0xff]  ;;  %v78_v7 = vld [vmem:[%s3063_s2 + $0x198] sm:$0xff] }
  0x92   :  { %v1995_v13 = vpop.permute.xlu0 %1994  ;;  %v1776_v15 = vpack.c.bf16 %v441_v11, %v440_v10  ;;  %v424_v24 = vsel %vm411_vm1, %v39_v18, %v1991_v17  ;;  %v425_v25 = vsel %vm411_vm1, %v40_v19, %v1992_v16  ;;  %v2122_v18 = vmov 0.0   ;;  %v927_v19 = vld [vmem:[%s3061_s0] sm:$0x3] }
  0x93   :  { %v1997_v20 = vunpack.i.h.bf16 %v1995_v13  ;;  %v1996_v21 = vunpack.i.l.bf16 %v1995_v13  ;;  %v2000_v28 = vpop.permute.xlu1 %1999  ;;  %v1779_v29 = vpack.c.bf16 %v425_v25, %v424_v24  ;;  %v62_v13 = vld [vmem:[%s3063_s2 + $0x118] sm:$0xff]  ;;  %v79_v24 = vld [vmem:[%s3063_s2 + $0x1a0] sm:$0xff]  ;;  %v80_v25 = vld [vmem:[%s3063_s2 + $0x1a8] sm:$0xff] }
  0x94   :  { %v2002_v31 = vunpack.i.h.bf16 %v2000_v28  ;;  %v2001_v32 = vunpack.i.l.bf16 %v2000_v28 }
  0x95   :  { %v442_v26 = vsel %vm411_vm1, %v57_v22, %v1996_v21  ;;  %v443_v27 = vsel %vm411_vm1, %v58_v23, %v1997_v20 }
  0x96   :  { %v1782_v30 = vpack.c.bf16 %v443_v27, %v442_v26  ;;  %v426_v35 = vsel %vm411_vm1, %v41_v33, %v2001_v32  ;;  %v427_v36 = vsel %vm411_vm1, %v42_v34, %v2002_v31  ;;  %v2005_v53 = vpop.permute.xlu0 %2004 }
  0x97   :  { %v1785_v37 = vpack.c.bf16 %v427_v36, %v426_v35  ;;  %v2007_v57 = vunpack.i.h.bf16 %v2005_v53  ;;  %v2006_v58 = vunpack.i.l.bf16 %v2005_v53  ;;  %v2010_v59 = vpop.permute.xlu1 %2009  ;;  %v63_v35 = vld [vmem:[%s3063_s2 + $0x120] sm:$0xff]  ;;  %v64_v36 = vld [vmem:[%s3063_s2 + $0x128] sm:$0xff] }
  0x98   :  { %1763 = vmatpush3.bf16.xpose.msk.msra.mxu0 %vm2412_vm2, %v1761_v45  ;;  %v931_v45 = vld [vmem:[%s3065_s4 + $0x18] sm:$0xff] }
  0x99   :  { %1766 = vmatprep.subr.msk.bf16.mxu0 %vm2412_vm2, %v1764_v46  ;;  %v1840_v46 = vpack.c.bf16 %v931_v45, %v930_v44  ;;  %v460_v0 = vsel %vm411_vm1, %v75_v54, %v2006_v58  ;;  %v461_v1 = vsel %vm411_vm1, %v76_v55, %v2007_v57  ;;  %v82_v44 = vld [vmem:[%s3063_s2 + $0x1b8] sm:$0xff] }
  0x9a   :  { %v1788_v2 = vpack.c.bf16 %v461_v1, %v460_v0  ;;  %v2015_v5 = vpop.permute.xlu0 %2014  ;;  %v66_v58 = vld [vmem:[%s3063_s2 + $0x138] sm:$0xff] }
  0x9b   :  { %v2017_v9 = vunpack.i.h.bf16 %v2015_v5  ;;  %v2016_v10 = vunpack.i.l.bf16 %v2015_v5  ;;  %v2020_v11 = vpop.permute.xlu1 %2019  ;;  %v67_v5 = vld [vmem:[%s3063_s2 + $0x140] sm:$0xff] }
  0x9c   :  { %1790 = vmatprep.subr.msk.bf16.mxu1 %vm2412_vm2, %v1788_v2  ;;  %v83_v2 = vld [vmem:[%s3063_s2 + $0x1c0] sm:$0xff] }
  0x9d   :  { %v462_v16 = vsel %vm411_vm1, %v77_v6, %v2016_v10  ;;  %v463_v17 = vsel %vm411_vm1, %v78_v7, %v2017_v9  ;;  %v68_v10 = vld [vmem:[%s3063_s2 + $0x148] sm:$0xff] }
  0x9e   :  { %v1794_v20 = vpack.c.bf16 %v463_v17, %v462_v16  ;;  %v2025_v23 = vpop.permute.xlu0 %2024 }
  0x9f   :  { %v2027_v26 = vunpack.i.h.bf16 %v2025_v23  ;;  %v2026_v27 = vunpack.i.l.bf16 %v2025_v23  ;;  %v2030_v28 = vpop.permute.xlu1 %2029 }
  0xa0   :  { %1769 = vmatpush3.bf16.xpose.msk.msra.mxu0 %vm2412_vm2, %v1767_v62  ;;  %v2012_v62 = vunpack.i.h.bf16 %v2010_v59  ;;  %v2032_v33 = vunpack.i.h.bf16 %v2030_v28  ;;  %v2031_v34 = vunpack.i.l.bf16 %v2030_v28 }
  0xa1   :  { %1772 = vmatprep.subr.msk.bf16.mxu0 %vm2412_vm2, %v1770_v63  ;;  %v2011_v63 = vunpack.i.l.bf16 %v2010_v59  ;;  %v465_v31 = vsel %vm411_vm1, %v80_v25, %v2027_v26 }
  0xa2   :  { %v445_v4 = vsel %vm411_vm1, %v60_v61, %v2012_v62  ;;  %v2035_v40 = vpop.permute.xlu0 %2034 }
  0xa3   :  { %v444_v3 = vsel %vm411_vm1, %v59_v60, %v2011_v63  ;;  %v2040_v45 = vpop.permute.xlu1 %2039  ;;  %v2037_v53 = vunpack.i.h.bf16 %v2035_v40  ;;  %v2036_v54 = vunpack.i.l.bf16 %v2035_v40 }
  0xa4   :  { %v1791_v8 = vpack.c.bf16 %v445_v4, %v444_v3  ;;  %v2042_v55 = vunpack.i.h.bf16 %v2040_v45  ;;  %v2041_v57 = vunpack.i.l.bf16 %v2040_v45  ;;  %v84_v3 = vld [vmem:[%s3063_s2 + $0x1c8] sm:$0xff]  ;;  %v71_v45 = vld [vmem:[%s3063_s2 + $0x160] sm:$0xff] }
  0xa5   :  { %v467_v60 = vsel %vm411_vm1, %v82_v44, %v2037_v53 }
  0xa6   :  { %1793 = vmatpush3.bf16.xpose.msk.msra.mxu1 %vm2412_vm2, %v1791_v8  ;;  %v451_v62 = vsel %vm411_vm1, %v66_v58, %v2042_v55  ;;  %v2045_v1 = vpop.permute.xlu0 %2044 }
  0xa7   :  { %1796 = vmatprep.subr.msk.bf16.mxu1 %vm2412_vm2, %v1794_v20  ;;  %v2050_v4 = vpop.permute.xlu1 %2049  ;;  %v2047_v6 = vunpack.i.h.bf16 %v2045_v1  ;;  %v2046_v7 = vunpack.i.l.bf16 %v2045_v1  ;;  %v86_v20 = vld [vmem:[%s3063_s2 + $0x1d8] sm:$0xff] }
  0xa8   :  { %1775 = vmatpush3.bf16.xpose.msk.msra.mxu0 %vm2412_vm2, %v1773_v14  ;;  %v2022_v14 = vunpack.i.h.bf16 %v2020_v11  ;;  %v2052_v8 = vunpack.i.h.bf16 %v2050_v4  ;;  %v2051_v9 = vunpack.i.l.bf16 %v2050_v4  ;;  %v73_v4 = vld [vmem:[%s3063_s2 + $0x170] sm:$0xff] }
  0xa9   :  { %1778 = vmatprep.subr.msk.bf16.mxu0 %vm2412_vm2, %v1776_v15  ;;  %v2021_v15 = vunpack.i.l.bf16 %v2020_v11  ;;  %v468_v11 = vsel %vm411_vm1, %v83_v2, %v2046_v7 }
  0xaa   :  { %v447_v22 = vsel %vm411_vm1, %v62_v13, %v2022_v14  ;;  %v452_v13 = vsel %vm411_vm1, %v67_v5, %v2051_v9  ;;  %v453_v14 = vsel %vm411_vm1, %v68_v10, %v2052_v8  ;;  %v2055_v17 = vpop.permute.xlu0 %2054  ;;  %v74_v5 = vld [vmem:[%s3063_s2 + $0x178] sm:$0xff]  ;;  %v2123_v8 = vmov 0  }
  0xab   :  { %v446_v21 = vsel %vm411_vm1, %v61_v12, %v2021_v15  ;;  %v469_v12 = vsel %vm411_vm1, %v84_v3, %v2047_v6  ;;  %v1815_v16 = vpack.c.bf16 %v453_v14, %v452_v13  ;;  %v2057_v23 = vunpack.i.h.bf16 %v2055_v17  ;;  %2083 = vset.pattern.permute.xlu0 %v2123_v8 }
  0xac   :  { %v1812_v15 = vpack.c.bf16 %v469_v12, %v468_v11 }
  0xb0   :  { %1781 = vmatpush3.bf16.xpose.msk.msra.mxu0 %vm2412_vm2, %v1779_v29  ;;  %v1797_v29 = vpack.c.bf16 %v447_v22, %v446_v21  ;;  %v2060_v21 = vpop.permute.xlu1 %2059  ;;  %v69_v22 = vld [vmem:[%s3063_s2 + $0x150] sm:$0xff] }
  0xb1   :  { %1784 = vmatprep.subr.msk.bf16.mxu0 %vm2412_vm2, %v1782_v30  ;;  %v464_v30 = vsel %vm411_vm1, %v79_v24, %v2026_v27  ;;  %v2056_v24 = vunpack.i.l.bf16 %v2055_v17  ;;  %v2062_v25 = vunpack.i.h.bf16 %v2060_v21  ;;  %v2061_v26 = vunpack.i.l.bf16 %v2060_v21  ;;  %v70_v27 = vld [vmem:[%s3063_s2 + $0x158] sm:$0xff] }
  0xb2   :  { %v1800_v32 = vpack.c.bf16 %v465_v31, %v464_v30  ;;  %1799 = vmatpush3.bf16.xpose.msk.msra.mxu1 %vm2412_vm2, %v1797_v29  ;;  %v471_v29 = vsel %vm411_vm1, %v86_v20, %v2057_v23 }
  0xb3   :  { %v454_v30 = vsel %vm411_vm1, %v69_v22, %v2061_v26  ;;  %v455_v31 = vsel %vm411_vm1, %v70_v27, %v2062_v25 }
  0xb4   :  { %1802 = vmatprep.subr.msk.bf16.mxu1 %vm2412_vm2, %v1800_v32  ;;  %v2070_v44 = vpop.permute.xlu1 %2069 }
  0xb5   :  { %v2072_v55 = vunpack.i.h.bf16 %v2070_v44 }
  0xb8   :  { %1787 = vmatpush3.bf16.xpose.msk.msra.mxu0 %vm2412_vm2, %v1785_v37  ;;  %v448_v37 = vsel %vm411_vm1, %v63_v35, %v2031_v34  ;;  %v2065_v34 = vpop.permute.xlu0 %2064  ;;  %v87_v35 = vld [vmem:[%s3063_s2 + $0x1e0] sm:$0xff]  ;;  %v2080_v3 = vpop.permute.xlu1 %2079 }
  0xb9   :  { %1836 = vmatprep.subr.bf16.mxu0 %v2120_v38  ;;  %v2082_v6 = vunpack.i.h.bf16 %v2080_v3  ;;  %v2081_v7 = vunpack.i.l.bf16 %v2080_v3 }
  0xbb   :  { %v458_v9 = vsel %vm411_vm1, %v73_v4, %v2081_v7  ;;  %v459_v10 = vsel %vm411_vm1, %v74_v5, %v2082_v6 }
  0xbc   :  { %v2075_v53 = vpop.permute.xlu0 %2074  ;;  %v1833_v11 = vpack.c.bf16 %v459_v10, %v458_v9 }
  0xbd   :  { %v2077_v58 = vunpack.i.h.bf16 %v2075_v53 }
  0xbf   :  { %1661 = vmatmul.mubr.msk.f32.vlgmr.msra.gmra.mrb[0].mxu0 %vm484_vm0, %v2282_v48 }
  0xc0   :  { %1662 = vmatprep.mubr.msk.f32.mxu0 %vm484_vm0, %v2579_v42  ;;  %1838 = vmatpush3.bf16.msra.mxu0 %v1837_v41  ;;  %v81_v41 = vld [vmem:[%s3063_s2 + $0x1b0] sm:$0xff]  ;;  %v1009_v20 = vpop.permute.xlu0 %1008 }
  0xc1   :  { %1839 = vmatprep.subr.bf16.mxu0 %v2120_v38  ;;  %v449_v38 = vsel %vm411_vm1, %v64_v36, %v2032_v33  ;;  %v466_v59 = vsel %vm411_vm1, %v81_v41, %v2036_v54  ;;  %v1821_v33 = vpack.c.bf16 %v455_v31, %v454_v30  ;;  %v88_v36 = vld [vmem:[%s3063_s2 + $0x1e8] sm:$0xff]  ;;  %v89_v54 = vld [vmem:[%s3063_s2 + $0x1f0] sm:$0xff] }
  0xc2   :  { %v1803_v39 = vpack.c.bf16 %v449_v38, %v448_v37  ;;  %v1806_v63 = vpack.c.bf16 %v467_v60, %v466_v59  ;;  %v2067_v37 = vunpack.i.h.bf16 %v2065_v34  ;;  %v2066_v38 = vunpack.i.l.bf16 %v2065_v34  ;;  %v90_v60 = vld [vmem:[%s3063_s2 + $0x1f8] sm:$0xff] }
  0xc3   :  { %1663 = vmatmul.mubr.msk.f32.gmra.mrb[2].mxu0 %vm484_vm0, %v2579_v42  ;;  %v2076_v59 = vunpack.i.l.bf16 %v2075_v53 }
  0xc4   :  { %1664 = vmatprep.mubr.msk.f32.mxu0 %vm484_vm0, %v2594_v47  ;;  %1841 = vmatpush3.bf16.msra.mxu0 %v1840_v46  ;;  %v65_v46 = vld [vmem:[%s3063_s2 + $0x130] sm:$0xff]  ;;  %v473_v40 = vsel %vm411_vm1, %v88_v36, %v2067_v37 }
  0xc5   :  { %1805 = vmatpush3.bf16.xpose.msk.msra.mxu1 %vm2412_vm2, %v1803_v39  ;;  %v450_v61 = vsel %vm411_vm1, %v65_v46, %v2041_v57  ;;  %v472_v39 = vsel %vm411_vm1, %v87_v35, %v2066_v38  ;;  %v72_v46 = vld [vmem:[%s3063_s2 + $0x168] sm:$0xff]  ;;  %v2071_v57 = vunpack.i.l.bf16 %v2070_v44 }
  0xc6   :  { %v1809_v0 = vpack.c.bf16 %v451_v62, %v450_v61  ;;  %1808 = vmatprep.subr.msk.bf16.mxu1 %vm2412_vm2, %v1806_v63  ;;  %v1824_v41 = vpack.c.bf16 %v473_v40, %v472_v39  ;;  %v457_v62 = vsel %vm411_vm1, %v72_v46, %v2072_v55  ;;  %v474_v63 = vsel %vm411_vm1, %v89_v54, %v2076_v59 }
  0xc7   :  { %1665 = vmatmul.mubr.msk.f32.gmra.mrb[4].mxu0 %vm484_vm0, %v2594_v47  ;;  %v456_v61 = vsel %vm411_vm1, %v71_v45, %v2071_v57 }
  0xc8   :  { %1666 = vmatprep.mubr.msk.f32.mxu0 %vm484_vm0, %v2603_v49  ;;  %v1827_v1 = vpack.c.bf16 %v457_v62, %v456_v61 }
  0xcb   :  { %1667 = vmatmul.mubr.msk.f32.gmra.mrb[6].mxu0 %vm484_vm0, %v2603_v49 }
  0xcc   :  { %1668 = vmatprep.mubr.msk.f32.mxu0 %vm484_vm0, %v2612_v50 }
  0xcd   :  { %1811 = vmatpush3.bf16.xpose.msk.msra.mxu1 %vm2412_vm2, %v1809_v0  ;;  %v475_v0 = vsel %vm411_vm1, %v90_v60, %v2077_v58 }
  0xce   :  { %1814 = vmatprep.subr.msk.bf16.mxu1 %vm2412_vm2, %v1812_v15  ;;  %v1830_v2 = vpack.c.bf16 %v475_v0, %v474_v63 }
  0xcf   :  { %1669 = vmatmul.mubr.msk.f32.gmra.mrb[8].mxu0 %vm484_vm0, %v2612_v50 }
  0xd0   :  { %1670 = vmatprep.mubr.msk.f32.mxu0 %vm484_vm0, %v2621_v51 }
  0xd3   :  { %1671 = vmatmul.mubr.msk.f32.gmra.mrb[10].mxu0 %vm484_vm0, %v2621_v51 }
  0xd4   :  { %1672 = vmatprep.mubr.msk.f32.mxu0 %vm484_vm0, %v2630_v52 }
  0xd5   :  { %1817 = vmatpush3.bf16.xpose.msk.msra.mxu1 %vm2412_vm2, %v1815_v16 }
  0xd7   :  { %1673 = vmatmul.mubr.msk.f32.gmra.mrb[12].mxu0 %vm484_vm0, %v2630_v52 }
  0xd8   :  { %1674 = vmatprep.mubr.msk.f32.mxu0 %vm484_vm0, %v2645_v56 }
  0xdb   :  { %1675 = vmatmul.mubr.msk.f32.gmra.mrb[14].mxu0 %vm484_vm0, %v2645_v56 }
  0xdc   :  { %1737 = vmatprep.mubr.msk.f32.mxu0 %vm2121_vm3, %v2122_v18 }
  0xdf   :  { %1738 = vmatmul.mubr.msk.f32.vlgmr.msra.gmra.mrb[16].mxu0 %vm932_vm4, %v927_v19  ;;  %v85_v19 = vld [vmem:[%s3063_s2 + $0x1d0] sm:$0xff] }
  0xe0   :  { %1267 = vmatprep.mubr.f32.mxu0 %v2122_v18  ;;  %v470_v28 = vsel %vm411_vm1, %v85_v19, %v2056_v24  ;;  %v2124_v24 = vmov 1  }
  0xe1   :  { %v1818_v32 = vpack.c.bf16 %v471_v29, %v470_v28 }
  0xe3   :  { %1820 = vmatprep.subr.msk.bf16.mxu1 %vm2412_vm2, %v1818_v32 }
  0xe4   :  { %1823 = vmatpush3.bf16.xpose.msk.msra.mxu1 %vm2412_vm2, %v1821_v33 }
  0xe5   :  { %1826 = vmatprep.subr.msk.bf16.mxu1 %vm2412_vm2, %v1824_v41 }
  0xec   :  { %1829 = vmatpush3.bf16.xpose.msk.msra.mxu1 %vm2412_vm2, %v1827_v1 }
  0xed   :  { %1832 = vmatprep.subr.msk.bf16.mxu1 %vm2412_vm2, %v1830_v2 }
  0xf4   :  { %1835 = vmatpush3.bf16.xpose.msk.msra.mxu1 %vm2412_vm2, %v1833_v11 }
  0xfb   :  { %1709 = vmatmul.mubr.msk.f32.vlgmr.msra.gmra.mrb[0].mxu1 %vm484_vm0, %v2282_v48 }
  0xfc   :  { %1710 = vmatprep.mubr.msk.f32.mxu1 %vm484_vm0, %v2579_v42 }
  0xff   :  { %1711 = vmatmul.mubr.msk.f32.gmra.mrb[2].mxu1 %vm484_vm0, %v2579_v42 }
 0x100   :  { %1712 = vmatprep.mubr.msk.f32.mxu1 %vm484_vm0, %v2594_v47 }
 0x103   :  { %1713 = vmatmul.mubr.msk.f32.gmra.mrb[4].mxu1 %vm484_vm0, %v2594_v47 }
 0x104   :  { %1714 = vmatprep.mubr.msk.f32.mxu1 %vm484_vm0, %v2603_v49 }
 0x107   :  { %1715 = vmatmul.mubr.msk.f32.gmra.mrb[6].mxu1 %vm484_vm0, %v2603_v49 }
 0x108   :  { %1716 = vmatprep.mubr.msk.f32.mxu1 %vm484_vm0, %v2612_v50 }
 0x10b   :  { %1717 = vmatmul.mubr.msk.f32.gmra.mrb[8].mxu1 %vm484_vm0, %v2612_v50 }
 0x10c   :  { %1718 = vmatprep.mubr.msk.f32.mxu1 %vm484_vm0, %v2621_v51 }
 0x10f   :  { %1719 = vmatmul.mubr.msk.f32.gmra.mrb[10].mxu1 %vm484_vm0, %v2621_v51 }
 0x110   :  { %1720 = vmatprep.mubr.msk.f32.mxu1 %vm484_vm0, %v2630_v52 }
 0x113   :  { %1721 = vmatmul.mubr.msk.f32.gmra.mrb[12].mxu1 %vm484_vm0, %v2630_v52 }
 0x114   :  { %1722 = vmatprep.mubr.msk.f32.mxu1 %vm484_vm0, %v2645_v56 }
 0x117   :  { %1723 = vmatmul.mubr.msk.f32.gmra.mrb[14].mxu1 %vm484_vm0, %v2645_v56 }
 0x118   :  { %1190 = vmatprep.mubr.f32.mxu1 %v2122_v18 }
 0x192   :  { %v2844_v48 = vpop.f32.mrb[0].mxu0 }
 0x193   :  { %v2846_v43 = vpop.f32.mrb[1].mxu0 }
 0x196   :  { %v2848_v42 = vpop.f32.mrb[2].mxu0 }
 0x197   :  { %v2850_v47 = vpop.f32.mrb[3].mxu0 }
 0x19a   :  { %v2852_v49 = vpop.f32.mrb[4].mxu0 }
 0x19b   :  { %v2854_v50 = vpop.f32.mrb[5].mxu0 }
 0x19e   :  { %v2856_v51 = vpop.f32.mrb[6].mxu0 }
 0x19f   :  { %v2858_v52 = vpop.f32.mrb[7].mxu0 }
 0x1a2   :  { %v2860_v12 = vpop.f32.mrb[8].mxu0 }
 0x1a3   :  { %v2862_v56 = vpop.f32.mrb[9].mxu0 }
 0x1a6   :  { %v2864_v13 = vpop.f32.mrb[10].mxu0 }
 0x1a7   :  { %v2866_v14 = vpop.f32.mrb[11].mxu0 }
 0x1aa   :  { %v2868_v15 = vpop.f32.mrb[12].mxu0 }
 0x1ab   :  { %v2870_v16 = vpop.f32.mrb[13].mxu0 }
 0x1ae   :  { %v2872_v17 = vpop.f32.mrb[14].mxu0 }
 0x1af   :  { %v2874_v19 = vpop.f32.mrb[15].mxu0 }
 0x1b2   :  { %v1002_v21 = vpop.f32.mrb[16].mxu0 }
 0x1b3   :  { %v1739_v22 = vpop.f32.mrb[17].mxu0  ;;  %v1012_v23 = vsel %vm1011_vm5, %v1002_v21, %v1009_v20 }
 0x1b4   :  { %1013 = vxpose.xlu1.b32.start.end [1/1] (short) (narrow) %v1012_v23, 64 }
 0x1ce   :  { %v2876_v25 = vpop.f32.mrb[0].mxu1 }
 0x1cf   :  { %v2878_v26 = vpop.f32.mrb[1].mxu1 }
 0x1d2   :  { %2086 = vset.pattern.permute.xlu1 %v2124_v24  ;;  %v2880_v28 = vpop.f32.mrb[2].mxu1 }
 0x1d3   :  { %v2882_v30 = vpop.f32.mrb[3].mxu1 }
 0x1d6   :  { %v2885_v31 = vpop.f32.mrb[4].mxu1 }
 0x1d7   :  { %v2887_v33 = vpop.f32.mrb[5].mxu1 }
 0x1da   :  { %v2889_v34 = vpop.f32.mrb[6].mxu1 }
 0x1db   :  { %v2891_v35 = vpop.f32.mrb[7].mxu1 }
 0x1de   :  { %v2894_v37 = vpop.f32.mrb[8].mxu1 }
 0x1df   :  { %v2896_v39 = vpop.f32.mrb[9].mxu1 }
 0x1e2   :  { %v2899_v41 = vpop.f32.mrb[10].mxu1 }
 0x1e3   :  { %v2901_v44 = vpop.f32.mrb[11].mxu1 }
 0x1e6   :  { %v2904_v46 = vpop.f32.mrb[12].mxu1 }
 0x1e7   :  { %v2906_v53 = vpop.f32.mrb[13].mxu1 }
 0x1ea   :  { %v2908_v55 = vpop.f32.mrb[14].mxu1 }
 0x1eb   :  { %v2910_v57 = vpop.f32.mrb[15].mxu1 }
 0x234   :  { %v1029_v27 = vpop.trf.xlu1 }
 0x235   :  { %1047 = vperm.xlu0 %2083, %v1029_v27  }
 0x238   :  { %v1030_v29 = vpop.trf.xlu1 }
 0x239   :  { %2084 = vset.pattern.permute.xlu0 %v2124_v24  ;;  %1293 = vperm.xlu1 %2086, %v1030_v29  }
 0x23a   :  { %1289 = vperm.xlu0 %2084, %v1029_v27  }
 0x23c   :  { %v1031_v32 = vpop.trf.xlu1 }
 0x23e   :  { %2085 = vset.pattern.permute.xlu0 %v2123_v8 }
 0x23f   :  { %1052 = vperm.xlu0 %2085, %v1030_v29  }
 0x240   :  { %v1032_v36 = vpop.trf.xlu1 }
 0x243   :  { %1057 = vperm.xlu0 %2085, %v1031_v32  }
 0x244   :  { %v1033_v38 = vpop.trf.xlu1 }
 0x247   :  { %2087 = vset.pattern.permute.xlu0 %v2124_v24 }
 0x248   :  { %1297 = vperm.xlu0 %2087, %v1031_v32   ;;  %v1034_v40 = vpop.trf.xlu1 }
 0x24c   :  { %2088 = vset.pattern.permute.xlu0 %v2123_v8  ;;  %v1035_v45 = vpop.trf.xlu1 }
 0x24d   :  { %1062 = vperm.xlu0 %2088, %v1032_v36  }
 0x250   :  { %v1036_v54 = vpop.trf.xlu1 }
 0x251   :  { %2089 = vset.pattern.permute.xlu0 %v2124_v24 }
 0x252   :  { %1301 = vperm.xlu0 %2089, %v1032_v36  }
 0x256   :  { %2090 = vset.pattern.permute.xlu0 %v2123_v8 }
 0x257   :  { %1067 = vperm.xlu0 %2090, %v1033_v38  }
 0x25b   :  { %2091 = vset.pattern.permute.xlu0 %v2124_v24 }
 0x25c   :  { %1305 = vperm.xlu0 %2091, %v1033_v38  }
 0x260   :  { %2092 = vset.pattern.permute.xlu0 %v2123_v8 }
 0x261   :  { %1072 = vperm.xlu0 %2092, %v1034_v40  }
 0x265   :  { %1077 = vperm.xlu0 %2092, %v1035_v45  }
 0x269   :  { %1082 = vperm.xlu0 %2092, %v1036_v54  }
 0x26d   :  { %2093 = vset.pattern.permute.xlu0 %v2124_v24 }
 0x26e   :  { %1309 = vperm.xlu0 %2093, %v1034_v40  }
 0x272   :  { %1313 = vperm.xlu0 %2093, %v1035_v45  }
 0x276   :  { %1317 = vperm.xlu0 %2093, %v1036_v54  }
 0x2b4   :  { %v1048_v58 = vpop.permute.xlu0 %1047 }
 0x2b5   :  { %v1085_v9 = vmul.f32 %v1048_v58, %v2844_v48  ;;  %v1086_v10 = vmul.f32 %v1048_v58, %v2846_v43  ;;  %v1087_v11 = vmul.f32 %v1048_v58, %v2876_v25  ;;  %v1088_v20 = vmul.f32 %v1048_v58, %v2878_v26 }
 0x2b8   :  { %v1294_v59 = vpop.permute.xlu1 %1293 }
 0x2b9   :  { %v2913_v60 = vmul.f32 %v1294_v59, %v2848_v42  ;;  %v2916_v61 = vmul.f32 %v1294_v59, %v2850_v47  ;;  %v1326_v62 = vmul.f32 %v1294_v59, %v2880_v28  ;;  %v1327_v63 = vmul.f32 %v1294_v59, %v2882_v30  ;;  %v1290_v0 = vpop.permute.xlu0 %1289 }
 0x2ba   :  { %v2921_v1 = vmul.f32 %v1290_v0, %v2844_v48  ;;  %v2924_v2 = vmul.f32 %v1290_v0, %v2846_v43  ;;  %v1322_v3 = vmul.f32 %v1290_v0, %v2876_v25  ;;  %v1323_v4 = vmul.f32 %v1290_v0, %v2878_v26 }
 0x2bc   :  { %v1874_v5 = vpack.c.bf16 %v2916_v61, %v2924_v2  ;;  %v2930_v6 = vpack.c.bf16 %v1327_v63, %v1323_v4  ;;  %v1876_v7 = vpack.c.bf16 %v2913_v60, %v2921_v1  ;;  %v2934_v8 = vpack.c.bf16 %v1326_v62, %v1322_v3 }
 0x2be   :  { %v1053_v21 = vpop.permute.xlu0 %1052 }
 0x2bf   :  { %v1089_v22 = vmul.f32 %v1053_v21, %v2848_v42  ;;  %v1090_v23 = vmul.f32 %v1053_v21, %v2850_v47  ;;  %v1091_v24 = vmul.f32 %v1053_v21, %v2880_v28  ;;  %v1092_v27 = vmul.f32 %v1053_v21, %v2882_v30 }
 0x2c1   :  { %v1842_v29 = vpack.c.bf16 %v1090_v23, %v1086_v10  ;;  %v1858_v32 = vpack.c.bf16 %v1092_v27, %v1088_v20  ;;  %v1844_v36 = vpack.c.bf16 %v1089_v22, %v1085_v9  ;;  %v1860_v38 = vpack.c.bf16 %v1091_v24, %v1087_v11 }
 0x2c2   :  { %v1058_v48 = vpop.permute.xlu0 %1057 }
 0x2c3   :  { %1843 = vmatprep.subr.bf16.mxu1 %v1842_v29  ;;  %1859 = vmatprep.subr.bf16.mxu0 %v1858_v32  ;;  %v1093_v25 = vmul.f32 %v1058_v48, %v2852_v49  ;;  %v1094_v42 = vmul.f32 %v1058_v48, %v2854_v50  ;;  %v1095_v47 = vmul.f32 %v1058_v48, %v2885_v31 }
 0x2c4   :  { %1845 = vmatpush1.bf16.msra.mxu1 %v1844_v36  ;;  %1861 = vmatpush1.bf16.msra.mxu0 %v1860_v38  ;;  %v1096_v26 = vmul.f32 %v1058_v48, %v2887_v33 }
 0x2c7   :  { %v1298_v43 = vpop.permute.xlu0 %1297 }
 0x2c8   :  { %v2953_v0 = vmul.f32 %v1298_v43, %v2852_v49  ;;  %v2956_v3 = vmul.f32 %v1298_v43, %v2854_v50  ;;  %v1330_v4 = vmul.f32 %v1298_v43, %v2885_v31  ;;  %v1331_v9 = vmul.f32 %v1298_v43, %v2887_v33 }
 0x2cc   :  { %v1063_v28 = vpop.permute.xlu0 %1062 }
 0x2cd   :  { %v1097_v30 = vmul.f32 %v1063_v28, %v2856_v51  ;;  %v1098_v40 = vmul.f32 %v1063_v28, %v2858_v52  ;;  %v1099_v45 = vmul.f32 %v1063_v28, %v2889_v34  ;;  %v1100_v54 = vmul.f32 %v1063_v28, %v2891_v35 }
 0x2cf   :  { %v1846_v58 = vpack.c.bf16 %v1098_v40, %v1094_v42  ;;  %v1862_v59 = vpack.c.bf16 %v1100_v54, %v1096_v26  ;;  %v1848_v62 = vpack.c.bf16 %v1097_v30, %v1093_v25  ;;  %v1864_v63 = vpack.c.bf16 %v1099_v45, %v1095_v47 }
 0x2d1   :  { %1847 = vmatprep.subr.bf16.mxu1 %v1846_v58  ;;  %1863 = vmatprep.subr.bf16.mxu0 %v1862_v59  ;;  %v1302_v10 = vpop.permute.xlu0 %1301 }
 0x2d2   :  { %v2961_v11 = vmul.f32 %v1302_v10, %v2856_v51  ;;  %v2964_v20 = vmul.f32 %v1302_v10, %v2858_v52  ;;  %v1334_v21 = vmul.f32 %v1302_v10, %v2889_v34  ;;  %v1335_v49 = vmul.f32 %v1302_v10, %v2891_v35  ;;  %1849 = vmatpush1.bf16.msra.mxu1 %v1848_v62 }
 0x2d3   :  { %1865 = vmatpush1.bf16.msra.mxu0 %v1864_v63 }
 0x2d4   :  { %v1878_v50 = vpack.c.bf16 %v2964_v20, %v2956_v3  ;;  %v2970_v31 = vpack.c.bf16 %v1335_v49, %v1331_v9  ;;  %v1880_v33 = vpack.c.bf16 %v2961_v11, %v2953_v0  ;;  %v2974_v22 = vpack.c.bf16 %v1334_v21, %v1330_v4 }
 0x2d6   :  { %v1068_v51 = vpop.permute.xlu0 %1067 }
 0x2d7   :  { %v1101_v52 = vmul.f32 %v1068_v51, %v2860_v12  ;;  %v1102_v34 = vmul.f32 %v1068_v51, %v2862_v56  ;;  %v1103_v35 = vmul.f32 %v1068_v51, %v2894_v37  ;;  %v1104_v24 = vmul.f32 %v1068_v51, %v2896_v39 }
 0x2db   :  { %v1306_v23 = vpop.permute.xlu0 %1305 }
 0x2dc   :  { %v1336_v21 = vmul.f32 %v1306_v23, %v2860_v12  ;;  %v1337_v49 = vmul.f32 %v1306_v23, %v2862_v56  ;;  %v1338_v51 = vmul.f32 %v1306_v23, %v2894_v37  ;;  %v1117_v12 = vld [vmem:[%s3066_s5] sm:$0xff] }
 0x2e0   :  { %v1073_v27 = vpop.permute.xlu0 %1072 }
 0x2e1   :  { %v1105_v29 = vmul.f32 %v1073_v27, %v2864_v13  ;;  %v1106_v32 = vmul.f32 %v1073_v27, %v2866_v14  ;;  %v1107_v36 = vmul.f32 %v1073_v27, %v2899_v41  ;;  %v1108_v38 = vmul.f32 %v1073_v27, %v2901_v44 }
 0x2e3   :  { %v1850_v48 = vpack.c.bf16 %v1106_v32, %v1102_v34  ;;  %v1866_v43 = vpack.c.bf16 %v1108_v38, %v1104_v24  ;;  %v1852_v25 = vpack.c.bf16 %v1105_v29, %v1101_v52  ;;  %v1868_v42 = vpack.c.bf16 %v1107_v36, %v1103_v35 }
 0x2e4   :  { %v1078_v47 = vpop.permute.xlu0 %1077  ;;  %v1339_v52 = vmul.f32 %v1306_v23, %v2896_v39 }
 0x2e5   :  { %1851 = vmatprep.subr.bf16.mxu1 %v1850_v48  ;;  %1867 = vmatprep.subr.bf16.mxu0 %v1866_v43  ;;  %v1109_v26 = vmul.f32 %v1078_v47, %v2868_v15  ;;  %v1110_v28 = vmul.f32 %v1078_v47, %v2870_v16  ;;  %v1111_v30 = vmul.f32 %v1078_v47, %v2904_v46 }
 0x2e6   :  { %1853 = vmatpush1.bf16.msra.mxu1 %v1852_v25  ;;  %1869 = vmatpush1.bf16.msra.mxu0 %v1868_v42  ;;  %v1112_v40 = vmul.f32 %v1078_v47, %v2906_v53 }
 0x2e8   :  { %v1083_v45 = vpop.permute.xlu0 %1082 }
 0x2e9   :  { %v1113_v54 = vmul.f32 %v1083_v45, %v2872_v17  ;;  %v1114_v58 = vmul.f32 %v1083_v45, %v2874_v19  ;;  %v1115_v59 = vmul.f32 %v1083_v45, %v2908_v55  ;;  %v1116_v62 = vmul.f32 %v1083_v45, %v2910_v57 }
 0x2eb   :  { %v1854_v63 = vpack.c.bf16 %v1114_v58, %v1110_v28  ;;  %v1870_v4 = vpack.c.bf16 %v1116_v62, %v1112_v40  ;;  %v1856_v9 = vpack.c.bf16 %v1113_v54, %v1109_v26  ;;  %v1872_v10 = vpack.c.bf16 %v1115_v59, %v1111_v30 }
 0x2ed   :  { %1855 = vmatprep.subr.bf16.mxu1 %v1854_v63  ;;  %1871 = vmatprep.subr.bf16.mxu0 %v1870_v4  ;;  %v1310_v34 = vpop.permute.xlu0 %1309 }
 0x2ee   :  { %v1340_v35 = vmul.f32 %v1310_v34, %v2864_v13  ;;  %v1341_v24 = vmul.f32 %v1310_v34, %v2866_v14  ;;  %v1342_v27 = vmul.f32 %v1310_v34, %v2899_v41  ;;  %v1343_v29 = vmul.f32 %v1310_v34, %v2901_v44  ;;  %1857 = vmatpush1.bf16.msra.mxu1 %v1856_v9  ;;  %v1118_v41 = vld [vmem:[%s3066_s5 + $0x8] sm:$0xff]  ;;  %s2125_s5 = smov [#allocation2]  }
 0x2ef   :  { %1873 = vmatpush1.bf16.msra.mxu0 %v1872_v10  ;;  %1875 = vmatprep.subr.bf16.mxu1 %v1874_v5  ;;  %s1528_s27 = sshll.u32 %s2125_s5, 4  ;;  %s1529_s27 = int_to_ptr.vmem [resolvable:$true] %s1528_s27 }
 0x2f0   :  { %1891 = vmatprep.subr.bf16.mxu0 %v2930_v6  ;;  %v1882_v56 = vpack.c.bf16 %v1341_v24, %v1337_v49  ;;  %v1898_v13 = vpack.c.bf16 %v1343_v29, %v1339_v52  ;;  %v1884_v37 = vpack.c.bf16 %v1340_v35, %v1336_v21  ;;  %v1900_v14 = vpack.c.bf16 %v1342_v27, %v1338_v51  ;;  %s2094_s4 = scalar_lea.vmem %s1529_s27, 2048  ;;  %p2099_p1 = scmp.lt.s32.totalorder %s1529_s27, %s1529_s27 }
 0x2f1   :  { %v1314_v39 = vpop.permute.xlu0 %1313  ;;  %1620 = vmatmul.mubr.msk.f32.vlgmr.msra.gmra.mrb[16].mxu1 %vm1119_vm6, %v1117_v12  ;;  %p2095_p0 = scmp.ne.s32.totalorder %s1529_s27, %s2094_s4  ;;  %p2100_p2 = scmp.lt.s32.totalorder %s2094_s4, %s2094_s4 }
 0x2f2   :  { %1622 = vmatmul.mubr.msk.f32.vlgmr.msra.gmra.mrb[18].mxu0 %vm1119_vm6, %v1117_v12  ;;  %1877 = vmatpush1.bf16.msra.mxu1 %v1876_v7  ;;  %v1344_v44 = vmul.f32 %v1314_v39, %v2868_v15  ;;  %v1345_v61 = vmul.f32 %v1314_v39, %v2870_v16  ;;  %v1346_v2 = vmul.f32 %v1314_v39, %v2904_v46 }
 0x2f3   :  { %1893 = vmatpush1.bf16.msra.mxu0 %v2934_v8  ;;  %1879 = vmatprep.subr.bf16.mxu1 %v1878_v50  ;;  %v1347_v15 = vmul.f32 %v1314_v39, %v2906_v53  ;;  %p2101_p3 = por %p2100_p2, %p2099_p1 }
 0x2f4   :  { %1895 = vmatprep.subr.bf16.mxu0 %v2970_v31  ;;  %1196 = vmatprep.mubr.f32.mxu1 %v2122_v18 }
 0x2f5   :  { %v1318_v60 = vpop.permute.xlu0 %1317  ;;  %1273 = vmatprep.mubr.f32.mxu0 %v2122_v18  ;;  %1621 = vmatmul.mubr.msk.f32.gmra.mrb[18].mxu1 %vm1119_vm6, %v1118_v41  ;;  %p2102_p4 = pnand %p2101_p3, %p2095_p0 }
 0x2f6   :  { %v1348_v1 = vmul.f32 %v1318_v60, %v2872_v17  ;;  %v1349_v5 = vmul.f32 %v1318_v60, %v2874_v19  ;;  %v1350_v7 = vmul.f32 %v1318_v60, %v2908_v55  ;;  %v1351_v3 = vmul.f32 %v1318_v60, %v2910_v57  ;;  %1881 = vmatpush1.bf16.msra.mxu1 %v1880_v33 }
 0x2f7   :  { %1897 = vmatpush1.bf16.msra.mxu0 %v2974_v22  ;;  %1883 = vmatprep.subr.bf16.mxu1 %v1882_v56 }
 0x2f8   :  { %v1888_v16 = vpack.c.bf16 %v1348_v1, %v1344_v44  ;;  %v1904_v46 = vpack.c.bf16 %v1350_v7, %v1346_v2  ;;  %1899 = vmatprep.subr.bf16.mxu0 %v1898_v13  ;;  %v1886_v17 = vpack.c.bf16 %v1349_v5, %v1345_v61  ;;  %v1902_v19 = vpack.c.bf16 %v1351_v3, %v1347_v15 }
 0x2f9   :  { %1424 = vmatprep.mubr.f32.mxu1 %v2122_v18  ;;  %1623 = vmatmul.mubr.msk.f32.gmra.mrb[20].mxu0 %vm1119_vm6, %v1118_v41 }
 0x2fa   :  { %1501 = vmatprep.mubr.f32.mxu0 %v2122_v18  ;;  %1885 = vmatpush1.bf16.msra.mxu1 %v1884_v37 }
 0x2fb   :  { %1901 = vmatpush1.bf16.msra.mxu0 %v1900_v14  ;;  %1887 = vmatprep.subr.bf16.mxu1 %v1886_v17 }
 0x2fc   :  { %1903 = vmatprep.subr.bf16.mxu0 %v1902_v19 }
 0x2fe   :  { %1889 = vmatpush1.bf16.msra.mxu1 %v1888_v16 }
 0x2ff   :  { %1905 = vmatpush1.bf16.msra.mxu0 %v1904_v46  ;;  %1906 = vmatprep.subr.bf16.mxu1 %v2930_v6 }
 0x301   :  { %1624 = vmatmul.mubr.msk.f32.vlgmr.msra.gmra.mrb[20].mxu1 %vm1119_vm6, %v1117_v12 }
 0x302   :  { %1626 = vmatmul.mubr.msk.f32.vlgmr.msra.gmra.mrb[22].mxu0 %vm1119_vm6, %v1117_v12  ;;  %1910 = vmatpush1.bf16.msra.mxu1 %v2934_v8 }
 0x303   :  { %1430 = vmatprep.mubr.f32.mxu1 %v2122_v18  ;;  %1907 = vmatprep.subr.bf16.mxu1 %v2970_v31 }
 0x305   :  { %1625 = vmatmul.mubr.msk.f32.gmra.mrb[22].mxu1 %vm1119_vm6, %v1118_v41 }
 0x306   :  { %1911 = vmatpush1.bf16.msra.mxu1 %v2974_v22  ;;  %1507 = vmatprep.mubr.f32.mxu1 %v2122_v18 }
 0x307   :  { %1908 = vmatprep.subr.bf16.mxu1 %v1898_v13 }
 0x30a   :  { %1912 = vmatpush1.bf16.msra.mxu1 %v1900_v14 }
 0x30b   :  { %1909 = vmatprep.subr.bf16.mxu1 %v1902_v19 }
 0x30e   :  { %1913 = vmatpush1.bf16.msra.mxu1 %v1904_v46 }
 0x311   :  { %1627 = vmatmul.mubr.msk.f32.vlgmr.msra.gmra.mrb[24].mxu1 %vm1119_vm6, %v1118_v41 }
 0x3c4   :  { %v1192_v53 = vpop.f32.mrb[16].mxu1 }
 0x3c5   :  { %1280 = vst [vmem:[#allocation2] sm:$0xff] %v1192_v53  ;;  %v1194_v55 = vpop.f32.mrb[17].mxu1  ;;  %v1269_v57 = vpop.f32.mrb[18].mxu0 }
 0x3c6   :  { %1281 = vst [vmem:[#allocation2 + $0x8] sm:$0xff] %v1194_v55  ;;  %1282 = vst [vmem:[#allocation2 + $0x10] sm:$0xff] %v1269_v57  ;;  %v1271_v6 = vpop.f32.mrb[19].mxu0 }
 0x3c7   :  { %1283 = vst [vmem:[#allocation2 + $0x18] sm:$0xff] %v1271_v6 }
 0x3c8   :  { %v1198_v8 = vpop.f32.mrb[18].mxu1 }
 0x3c9   :  { %1284 = vst [vmem:[#allocation2 + $0x20] sm:$0xff] %v1198_v8  ;;  %v1200_v0 = vpop.f32.mrb[19].mxu1 }
 0x3ca   :  { %1285 = vst [vmem:[#allocation2 + $0x28] sm:$0xff] %v1200_v0 }
 0x3cc   :  { %v1275_v11 = vpop.f32.mrb[20].mxu0 }
 0x3cd   :  { %1286 = vst [vmem:[#allocation2 + $0x30] sm:$0xff] %v1275_v11  ;;  %v1277_v18 = vpop.f32.mrb[21].mxu0 }
 0x3ce   :  { %1287 = vst [vmem:[#allocation2 + $0x38] sm:$0xff] %v1277_v18 }
 0x3d4   :  { %v1426_v20 = vpop.f32.mrb[20].mxu1 }
 0x3d5   :  { %v1503_v50 = vpop.f32.mrb[22].mxu0  ;;  %1515 = vst [vmem:[#allocation2 + $0x40] sm:$0xff] %v1426_v20  ;;  %v1428_v31 = vpop.f32.mrb[21].mxu1 }
 0x3d6   :  { %1517 = vst [vmem:[#allocation2 + $0x50] sm:$0xff] %v1503_v50  ;;  %v1505_v33 = vpop.f32.mrb[23].mxu0  ;;  %1516 = vst [vmem:[#allocation2 + $0x48] sm:$0xff] %v1428_v31 }
 0x3d7   :  { %1518 = vst [vmem:[#allocation2 + $0x58] sm:$0xff] %v1505_v33 }
 0x3d8   :  { %v1432_v22 = vpop.f32.mrb[22].mxu1 }
 0x3d9   :  { %1519 = vst [vmem:[#allocation2 + $0x60] sm:$0xff] %v1432_v22  ;;  %v1434_v23 = vpop.f32.mrb[23].mxu1 }
 0x3da   :  { %1520 = vst [vmem:[#allocation2 + $0x68] sm:$0xff] %v1434_v23 }
 0x3e4   :  { %v1509_v32 = vpop.f32.mrb[24].mxu1 }
 0x3e5   :  { %1521 = vst [vmem:[#allocation2 + $0x70] sm:$0xff] %v1509_v32  ;;  %v1511_v36 = vpop.f32.mrb[25].mxu1 }
 0x3e6   :  { %1522 = vst [vmem:[#allocation2 + $0x78] sm:$0xff] %v1511_v36 }
 0x3e7   :  { %2105 = shalt.err (!%p2102_p4)
}
 0x3e8   :  { %s2106_s30 = scalar_lea.hbm %s3068_s7, 2048 }
 0x3e9   :  { %p2107_p5 = scmp.ne.s32.totalorder %s3068_s7, %s2106_s30  ;;  %p2110_p6 = scmp.lt.u32.totalorder %s2106_s30, %s3068_s7 }
 0x3eb   :  { %p2112_p7 = pnand %p2110_p6, %p2107_p5 }
 0x3ed   :  { %2115 = shalt.err (!%p2112_p7)
}
 0x3ee   :  { %s2126_s10 = smov 512  }
 0x3ef   :  { %1534 = dma.vmem_to_hbm [thread:$0]  %s1529_s27, 2048, %s3068_s7, [#allocation3], %s2126_s10, %s2126_s10, %s2119_s21  }
 0x3f0   :  { %2116 = dma.done.wait [#allocation3], 2048  }
 0x3f1   :  { %2117 = vsyncadd [#allocation3], 4294965248 }
 0x3f2   :  { %1538 = vsyncpa [#allocation3], 1 }

</bundles_post_ra>
